<compile_context>
chip_gen: v7x
topology: tpu7x:2x2x1
jax: 0.10.0
libtpu: 0.0.40
codegen_flags: <defaults>
</compile_context>

<pallas_src>
import math
from functools import partial

import jax
import jax.numpy as jnp
import numpy as np
from jax.experimental import pallas as pl
from jax.experimental.pallas import tpu as pltpu

# ------------------------- model configuration ------------------------------
LATENT_SIZE = 13
DIMS_HIDDEN = [32, 32, 32, 32]
LATENT_IN = (2,)
DROPOUT = (0, 1, 2, 3)
DROPOUT_PROB = 0.2
INV_SQRT2 = 1.0 / math.sqrt(2.0)

DIMS = [LATENT_SIZE + 3] + DIMS_HIDDEN + [1]          # [16, 32, 32, 32, 32, 1]
NUM_LAYERS = len(DIMS)                                # 6

# Row offsets of each feature-major (out, in) weight inside the packed slab.
# All offsets are multiples of 16 (bf16 packed-tile height) and 8 (f32 tiles).
_R0, _R1, _R2, _R3, _R4, _ROWS = 0, 32, 48, 80, 112, 120


def _layer_dims():
    """(in_dim, out_dim) per linear layer, replicating __init__ logic."""
    shapes = []
    for l in range(NUM_LAYERS - 1):
        if l + 1 in LATENT_IN:
            out_dim = DIMS[l + 1] - DIMS[0]
        else:
            out_dim = DIMS[l + 1]
        shapes.append((DIMS[l], out_dim))
    return shapes


def init_params(key):
    """Deterministic init replicating Decoder.__init__ (weight stored (in, out))."""
    params = []
    shapes = _layer_dims()
    for l, (din, dout) in enumerate(shapes):
        key, wk = jax.random.split(key)
        p = (1.0 - DROPOUT_PROB) if l in DROPOUT else 1.0
        if l == NUM_LAYERS - 2:  # last layer
            mean = 2.0 * math.sqrt(math.pi) / math.sqrt(p * DIMS[l])
            w = mean + 1e-6 * jax.random.normal(wk, (din, dout), jnp.float32)
            b = jnp.full((dout,), -1.0, jnp.float32)
        else:
            std = math.sqrt(2.0) / math.sqrt(p * dout)
            w = std * jax.random.normal(wk, (din, dout), jnp.float32)
            b = jnp.zeros((dout,), jnp.float32)
        params.append((w, b))
    return params


# ------------------------------ Pallas kernel --------------------------------
def decoder_kernel(x_ref, w_ref, b_ref, out_ref):
    """Feature-major MLP on a (16, TM) bf16 point tile.

    w_ref: (120, 32) bf16 slab of feature-major (out, in) weights.
    b_ref: (120, 1)  f32 slab of biases.
    Static ref slices pick out each layer; biases/ReLU run in f32 (VPU slack).
    """
    inp = x_ref[...]                                              # (16, TM) bf16

    # l = 0
    a = jnp.dot(w_ref[_R0:_R1, 0:16], inp,
                preferred_element_type=jnp.float32) + b_ref[_R0:_R1, :]
    h = jnp.maximum(a, 0.0).astype(jnp.bfloat16)                  # (32, TM)

    # l = 1  (output dim shrunk because l+1 in latent_in)
    a = jnp.dot(w_ref[_R1:_R2, 0:32], h,
                preferred_element_type=jnp.float32) + b_ref[_R1:_R2, :]
    h = jnp.maximum(a, 0.0).astype(jnp.bfloat16)                  # (16, TM)

    # l = 2  latent_in skip: concat([h, input], features) * 1/sqrt(2) with the
    # scale pre-folded into W2 — a single fused K=32 MXU stream.
    hc = jnp.concatenate([h, inp], axis=0)                        # (32, TM)
    a = jnp.dot(w_ref[_R2:_R3, 0:32], hc,
                preferred_element_type=jnp.float32) + b_ref[_R2:_R3, :]
    h = jnp.maximum(a, 0.0).astype(jnp.bfloat16)                  # (32, TM)

    # l = 3
    a = jnp.dot(w_ref[_R3:_R4, 0:32], h,
                preferred_element_type=jnp.float32) + b_ref[_R3:_R4, :]
    h = jnp.maximum(a, 0.0).astype(jnp.bfloat16)                  # (32, TM)

    # l = 4  (final layer, no ReLU) — lane-dense (1, TM) f32 store
    out_ref[...] = (jnp.dot(w_ref[_R4:_R4 + 1, 0:32], h,
                            preferred_element_type=jnp.float32)
                    + b_ref[_R4:_R4 + 1, :])
    # TODO(synk): training-mode dropout (F.dropout) omitted — inference semantics.


# ------------------------------ host wrapper ----------------------------------
def _pack_params(params):
    """Pack the 5 (w, b) pairs into one bf16 weight slab + one f32 bias slab."""
    (w0, b0), (w1, b1), (w2, b2), (w3, b3), (w4, b4) = params

    def fm(w):  # (in, out) -> feature-major (out, in), f32
        return jnp.asarray(w, jnp.float32).T

    w2_fm = fm(w2) * INV_SQRT2        # fold latent_in 1/sqrt(2) into W2
                                      # (cols 0:16 act on h, 16:32 on input)

    w_slab = jnp.zeros((_ROWS, 32), jnp.float32)
    w_slab = w_slab.at[_R0:_R1, 0:16].set(fm(w0))
    w_slab = w_slab.at[_R1:_R2, 0:32].set(fm(w1))
    w_slab = w_slab.at[_R2:_R3, 0:32].set(w2_fm)
    w_slab = w_slab.at[_R3:_R4, 0:32].set(fm(w3))
    w_slab = w_slab.at[_R4:_R4 + 1, 0:32].set(fm(w4))

    b_slab = jnp.zeros((_ROWS, 1), jnp.float32)
    b_slab = b_slab.at[_R0:_R1, 0].set(jnp.asarray(b0, jnp.float32))
    b_slab = b_slab.at[_R1:_R2, 0].set(jnp.asarray(b1, jnp.float32))
    b_slab = b_slab.at[_R2:_R3, 0].set(jnp.asarray(b2, jnp.float32))
    b_slab = b_slab.at[_R3:_R4, 0].set(jnp.asarray(b3, jnp.float32))
    b_slab = b_slab.at[_R4:_R4 + 1, 0].set(jnp.asarray(b4, jnp.float32))

    return w_slab.astype(jnp.bfloat16), b_slab


@partial(jax.jit, static_argnames=("tm",))
def decoder_forward(x, params, *, tm=8192):
    """x: (N, 16) points-major f32 input; returns (N, 1) like the PyTorch module."""
    n, d0 = x.shape
    assert d0 == DIMS[0]

    # Point tile on the lane axis: multiple of 128, big enough to amortize the
    # ~0.35us per-grid-step overhead, capped so the grid has >= 2 "parallel"
    # steps whenever possible (keeps both v7x TensorCores busy).
    n_pad128 = ((n + 127) // 128) * 128
    tm_cap = n_pad128 if n_pad128 < 256 else max(128, ((n_pad128 // 2) // 128) * 128)
    tm_eff = max(128, (min(tm, tm_cap) // 128) * 128)
    n_pad = pl.cdiv(n, tm_eff) * tm_eff          # wrapper-side padding, no assert

    # Feature-major bf16 input (16, n_pad): pad + cast + transpose fuse under jit.
    x_t = jnp.zeros((d0, n_pad), jnp.bfloat16).at[:, :n].set(
        x.astype(jnp.bfloat16).T)

    w_slab, b_slab = _pack_params(params)

    flops = 2 * n_pad * (32 * 16 + 16 * 32 + 32 * 32 + 32 * 32 + 1 * 32)
    bytes_accessed = n_pad * (d0 * 2 + 4) + w_slab.size * 2 + b_slab.size * 4

    out = pl.pallas_call(
        decoder_kernel,
        out_shape=jax.ShapeDtypeStruct((1, n_pad), jnp.float32),
        grid_spec=pltpu.PrefetchScalarGridSpec(
            num_scalar_prefetch=0,
            grid=(n_pad // tm_eff,),
            in_specs=[
                pl.BlockSpec((d0, tm_eff), lambda i: (0, i)),   # points tile
                pl.BlockSpec((_ROWS, 32), lambda i: (0, 0)),    # weight slab
                pl.BlockSpec((_ROWS, 1), lambda i: (0, 0)),     # bias slab
            ],
            out_specs=pl.BlockSpec((1, tm_eff), lambda i: (0, i)),
        ),
        compiler_params=pltpu.CompilerParams(
            dimension_semantics=("parallel",)),
        cost_estimate=pl.CostEstimate(
            flops=flops, transcendentals=0, bytes_accessed=bytes_accessed),
    )(x_t, w_slab, b_slab)

    return out[:, :n].T                          # (N, 1) f32


# --------------------------- pure-JAX reference -------------------------------
def decoder_ref(x, params):
    inp = x
    h = x
    for l, (w, b) in enumerate(params):
        if l in LATENT_IN:
            h = jnp.concatenate([h, inp], axis=1) * INV_SQRT2
        h = h @ w + b
        if l < NUM_LAYERS - 2:
            h = jnp.maximum(h, 0.0)
    return h


# ------------------------------------ main ------------------------------------
if __name__ == "__main__":
    key = jax.random.PRNGKey(0)
    pkey, xkey = jax.random.split(key)

    params = init_params(pkey)

    N = 256                                   # number of (latent, xyz) query points
    x = jax.random.normal(xkey, (N, LATENT_SIZE + 3), jnp.float32)

    out = decoder_forward(x, params)
    out = jax.block_until_ready(out)

    ref = decoder_ref(x, params)
    # bf16 matmul operands (f32 accumulation) -> relaxed tolerance vs f32 ref.
    np.testing.assert_allclose(np.asarray(out, np.float32), np.asarray(ref),
                               rtol=5e-2, atol=5e-2)

    print("KERNEL_OK")
</pallas_src>

<mosaic_0001>
module attributes {stable_mosaic.version = 11 : i64} {
  func.func @decoder_kernel(%arg0: i32, %arg1: memref<16x128xbf16, #tpu.memory_space<vmem>>, %arg2: memref<120x32xbf16, #tpu.memory_space<vmem>>, %arg3: memref<120x1xf32, #tpu.memory_space<vmem>>, %arg4: memref<1x128xf32, #tpu.memory_space<vmem>>) attributes {dimension_semantics = [#tpu.dimension_semantics<parallel>], iteration_bounds = array<i64: 2>, scalar_prefetch = 0 : i64, scratch_operands = 0 : i64, tpu.core_type = #tpu.core_type<tc>, window_params = [{transform_indices = @transform_0, window_bounds = array<i64: 16, 128>}, {pipeline_mode = #tpu.pipeline_mode<synchronous>, transform_indices = @transform_1, window_bounds = array<i64: 120, 32>}, {pipeline_mode = #tpu.pipeline_mode<synchronous>, transform_indices = @transform_2, window_bounds = array<i64: 120, 1>}, {transform_indices = @transform_3, window_bounds = array<i64: 1, 128>}]} {
    %c0 = arith.constant 0 : index
    %c0_0 = arith.constant 0 : index
    %0 = vector.load %arg1[%c0, %c0_0] : memref<16x128xbf16, #tpu.memory_space<vmem>>, vector<16x128xbf16>
    %c0_1 = arith.constant 0 : index
    %c0_2 = arith.constant 0 : index
    %1 = vector.load %arg2[%c0_1, %c0_2] : memref<120x32xbf16, #tpu.memory_space<vmem>>, vector<32x16xbf16>
    %cst = arith.constant dense<0.000000e+00> : vector<32x128xf32>
    %2 = tpu.matmul %1, %0, %cst {dimension_numbers = #tpu.dot_dimension_numbers<[1], [0], [0], [1], [0, 0, 1, 1], [], []>} : vector<32x16xbf16>, vector<16x128xbf16>, vector<32x128xf32> -> vector<32x128xf32>
    %c0_3 = arith.constant 0 : index
    %c0_4 = arith.constant 0 : index
    %3 = vector.load %arg3[%c0_3, %c0_4] : memref<120x1xf32, #tpu.memory_space<vmem>>, vector<32x1xf32>
    %4 = vector.broadcast %3 : vector<32x1xf32> to vector<32x128xf32>
    %5 = arith.addf %2, %4 : vector<32x128xf32>
    %cst_5 = arith.constant 0.000000e+00 : f32
    %6 = vector.broadcast %cst_5 : f32 to vector<32x128xf32>
    %7 = arith.maximumf %5, %6 : vector<32x128xf32>
    %8 = arith.truncf %7 : vector<32x128xf32> to vector<32x128xbf16>
    %c32 = arith.constant 32 : index
    %c0_6 = arith.constant 0 : index
    %9 = vector.load %arg2[%c32, %c0_6] : memref<120x32xbf16, #tpu.memory_space<vmem>>, vector<16x32xbf16>
    %cst_7 = arith.constant dense<0.000000e+00> : vector<16x128xf32>
    %10 = tpu.matmul %9, %8, %cst_7 {dimension_numbers = #tpu.dot_dimension_numbers<[1], [0], [0], [1], [0, 0, 1, 1], [], []>} : vector<16x32xbf16>, vector<32x128xbf16>, vector<16x128xf32> -> vector<16x128xf32>
    %c32_8 = arith.constant 32 : index
    %c0_9 = arith.constant 0 : index
    %11 = vector.load %arg3[%c32_8, %c0_9] : memref<120x1xf32, #tpu.memory_space<vmem>>, vector<16x1xf32>
    %12 = vector.broadcast %11 : vector<16x1xf32> to vector<16x128xf32>
    %13 = arith.addf %10, %12 : vector<16x128xf32>
    %cst_10 = arith.constant 0.000000e+00 : f32
    %14 = vector.broadcast %cst_10 : f32 to vector<16x128xf32>
    %15 = arith.maximumf %13, %14 : vector<16x128xf32>
    %16 = arith.truncf %15 : vector<16x128xf32> to vector<16x128xbf16>
    %17 = tpu.concatenate %16, %0 in 0 : vector<16x128xbf16>, vector<16x128xbf16> -> vector<32x128xbf16>
    %c48 = arith.constant 48 : index
    %c0_11 = arith.constant 0 : index
    %18 = vector.load %arg2[%c48, %c0_11] : memref<120x32xbf16, #tpu.memory_space<vmem>>, vector<32x32xbf16>
    %cst_12 = arith.constant dense<0.000000e+00> : vector<32x128xf32>
    %19 = tpu.matmul %18, %17, %cst_12 {dimension_numbers = #tpu.dot_dimension_numbers<[1], [0], [0], [1], [0, 0, 1, 1], [], []>} : vector<32x32xbf16>, vector<32x128xbf16>, vector<32x128xf32> -> vector<32x128xf32>
    %c48_13 = arith.constant 48 : index
    %c0_14 = arith.constant 0 : index
    %20 = vector.load %arg3[%c48_13, %c0_14] : memref<120x1xf32, #tpu.memory_space<vmem>>, vector<32x1xf32>
    %21 = vector.broadcast %20 : vector<32x1xf32> to vector<32x128xf32>
    %22 = arith.addf %19, %21 : vector<32x128xf32>
    %cst_15 = arith.constant 0.000000e+00 : f32
    %23 = vector.broadcast %cst_15 : f32 to vector<32x128xf32>
    %24 = arith.maximumf %22, %23 : vector<32x128xf32>
    %25 = arith.truncf %24 : vector<32x128xf32> to vector<32x128xbf16>
    %c80 = arith.constant 80 : index
    %c0_16 = arith.constant 0 : index
    %26 = vector.load %arg2[%c80, %c0_16] : memref<120x32xbf16, #tpu.memory_space<vmem>>, vector<32x32xbf16>
    %cst_17 = arith.constant dense<0.000000e+00> : vector<32x128xf32>
    %27 = tpu.matmul %26, %25, %cst_17 {dimension_numbers = #tpu.dot_dimension_numbers<[1], [0], [0], [1], [0, 0, 1, 1], [], []>} : vector<32x32xbf16>, vector<32x128xbf16>, vector<32x128xf32> -> vector<32x128xf32>
    %c80_18 = arith.constant 80 : index
    %c0_19 = arith.constant 0 : index
    %28 = vector.load %arg3[%c80_18, %c0_19] : memref<120x1xf32, #tpu.memory_space<vmem>>, vector<32x1xf32>
    %29 = vector.broadcast %28 : vector<32x1xf32> to vector<32x128xf32>
    %30 = arith.addf %27, %29 : vector<32x128xf32>
    %cst_20 = arith.constant 0.000000e+00 : f32
    %31 = vector.broadcast %cst_20 : f32 to vector<32x128xf32>
    %32 = arith.maximumf %30, %31 : vector<32x128xf32>
    %33 = arith.truncf %32 : vector<32x128xf32> to vector<32x128xbf16>
    %c112 = arith.constant 112 : index
    %c0_21 = arith.constant 0 : index
    %34 = vector.load %arg2[%c112, %c0_21] : memref<120x32xbf16, #tpu.memory_space<vmem>>, vector<1x32xbf16>
    %cst_22 = arith.constant dense<0.000000e+00> : vector<1x128xf32>
    %35 = tpu.matmul %34, %33, %cst_22 {dimension_numbers = #tpu.dot_dimension_numbers<[1], [0], [0], [1], [0, 0, 1, 1], [], []>} : vector<1x32xbf16>, vector<32x128xbf16>, vector<1x128xf32> -> vector<1x128xf32>
    %c112_23 = arith.constant 112 : index
    %c0_24 = arith.constant 0 : index
    %36 = vector.load %arg3[%c112_23, %c0_24] : memref<120x1xf32, #tpu.memory_space<vmem>>, vector<1x1xf32>
    %37 = vector.broadcast %36 : vector<1x1xf32> to vector<1x128xf32>
    %38 = arith.addf %35, %37 : vector<1x128xf32>
    %c0_25 = arith.constant 0 : index
    %c0_26 = arith.constant 0 : index
    %39 = vector.load %arg4[%c0_25, %c0_26] : memref<1x128xf32, #tpu.memory_space<vmem>>, vector<1x128xf32>
    tpu.vector_store %arg4[%c0_25, %c0_26], %38 {strides = array<i32>} : memref<1x128xf32, #tpu.memory_space<vmem>>, vector<1x128xf32>,
    return
  }
  func.func @transform_0(%arg0: i32) -> (i32, i32) {
    %c0_i32 = arith.constant 0 : i32
    %c0_i32_0 = arith.constant 0 : i32
    return %c0_i32, %arg0 : i32, i32
  }
  func.func @transform_1(%arg0: i32) -> (i32, i32) {
    %c0_i32 = arith.constant 0 : i32
    %c0_i32_0 = arith.constant 0 : i32
    %c0_i32_1 = arith.constant 0 : i32
    return %c0_i32, %c0_i32_0 : i32, i32
  }
  func.func @transform_2(%arg0: i32) -> (i32, i32) {
    %c0_i32 = arith.constant 0 : i32
    %c0_i32_0 = arith.constant 0 : i32
    %c0_i32_1 = arith.constant 0 : i32
    return %c0_i32, %c0_i32_0 : i32, i32
  }
  func.func @transform_3(%arg0: i32) -> (i32, i32) {
    %c0_i32 = arith.constant 0 : i32
    %c0_i32_0 = arith.constant 0 : i32
    return %c0_i32, %arg0 : i32, i32
  }
}

</mosaic_0001>

<bundles_post_ra>
// kernel: decoder_forward.1
= control target key start
LH: loop header
LB: loop body
LE: loop exit
PB: predicated region body
PF: predicated region fallthrough
CT: control target
= control target key end

     0   :  { %8 = vsyncpa [#allocation4], 0  ;;  %s1134_s0 = inlined_call_operand.vmem [shape: bf16[16,256], index: 0, kind: input, shape index: {}]   ;;  %s1135_s1 = inlined_call_operand.vmem [shape: bf16[120,32], index: 1, kind: input, shape index: {}]   ;;  %s1136_s2 = inlined_call_operand.vmem [shape: f32[120,1], index: 2, kind: input, shape index: {}]   ;;  %s1137_s3 = inlined_call_operand.hbm [shape: f32[1,256], index: 3, kind: output, shape index: {}]  }
   0x1   :  { %10 = vsyncpa [#allocation4 + $0x1], 0  ;;  %s933_s12 = smov 0   ;;  %s935_s13 = smov 0  }
   0x2   :  { %s937_s14 = smov 0   ;;  %s939_s15 = smov 0  }
   0x3 LB: > { %s711_s16 = sadd.s32 4294967295, %s907_s15   ;;  %s712_s17 = sadd.s32 4294967294, %s907_s15   ;;  %s907_s15 = sphi %s939_s15, %s1143_s15   ;;  %s903_s14 = sphi %s937_s14, %s1142_s14   ;;  %s899_s13 = sphi %s935_s13, %s1141_s13   ;;  %s895_s12 = sphi %s933_s12, %s1140_s12  }
   0x4   : > { %s956_s18 = sadd.s32 1, %s907_s15   ;;  %s23_s19 = sadd.s32 1, %s903_s14 }
   0x5   : > { %s20_s20 = ssub.s32 %s907_s15, %s956_s18  ;;  %p30_p0 = scmp.ne.s32.totalorder %s903_s14, %s899_s13 }
   0x6   : > { %p21_p1 = scmp.eq.s32.totalorder %s20_s20, 0  ;;  %p31_p2 = scmp.eq.s32.totalorder %s907_s15, 0 }
   0x7   : > { %p102_p3 = scmp.eq.s32.totalorder %s711_s16, 1  ;;  %p107_p4 = scmp.ne.s32.totalorder %s899_s13, %s895_s12 }
   0x8   : > { %s969_s21 = scalar_select %p21_p1, %s903_s14, %s23_s19  }
   0x9   : > { %p32_p5 = por %p31_p2, %p30_p0  ;;  %p971_p6 = por %p102_p3, %p30_p0 }
   0xa   : > { %p108_p7 = scmp.eq.s32.totalorder %s712_s17, 1  ;;  %p714_p9 = scmp.ge.s32.totalorder %s907_s15, 2 }
   0xc   : > { %p975_p8 = por %p108_p7, %p107_p4  ;;  %130 = sbr.rel (%p714_p9) target bundleno = 26 (0x1a), region = 24 }
  0x13   : > { %133 = sbr.rel (!%p32_p5) target bundleno = 26 (0x1a), region = 28  ;;  %s135_s24 = sand.u32 (%p32_p5), 1, %s903_s14  }
  0x14   : > { %s716_s25 = sshll.u32 (%p32_p5), %s907_s15, 2  ;;  %s715_s26 = sshll.u32 (%p32_p5), %s135_s24, 3 }
  0x15   : > { %s139_s29 = scalar_lea.vmem (%p32_p5), %s1134_s0, %s716_s25  ;;  %s137_s30 = scalar_lea.vmem (%p32_p5), [#allocation2], %s715_s26 }
  0x16   : > { %v155_v0 = vld [vmem:[%s139_s29] sm:$0xf] (%p32_p5)  ;;  %v157_v1 = vld [vmem:[%s139_s29 + $0x8] sm:$0xf] (%p32_p5) }
  0x17   : > { %156 = vst [vmem:[%s137_s30] sm:$0xf] (%p32_p5), %v155_v0  ;;  %158 = vst [vmem:[%s137_s30 + $0x4] sm:$0xf] (%p32_p5), %v157_v1 }
  0x1a PF: > { %p717_p10 = scmp.ge.s32.totalorder %s907_s15, 1  ;;  %p184_p11 = scmp.lt.s32.totalorder %s907_s15, 3 }
  0x1c   : > { %p185_p12 = pnand %p717_p10, %p184_p11 }
  0x1d   : > { %s990_s4 = sand.u32 (!%p185_p12), 1, %s899_s13   ;;  %v838_v2 = vld [vmem:[%s1135_s1] sm:$0xff] (!%p185_p12)   ;;  %vm260_vm0 = vcmask (!%p185_p12), 130048   ;;  %v909_v5 = vmov (!%p185_p12), 0   ;;  %v222_v6 = vld [vmem:[%s1136_s2 + $0x10] sm:$0xff] (!%p185_p12)  ;;  %v839_v7 = vld [vmem:[%s1135_s1 + $0x8] sm:$0xff] (!%p185_p12)  }
  0x1e   : > { %188 = sbr.rel (%p185_p12) target bundleno = 1178 (0x49a), region = 69  ;;  %s718_s7 = sshll.u32 (!%p185_p12), %s990_s4, 3  ;;  %757 = vmatprep.mubr.msk.bf16.mxu0 (!%p185_p12), %vm260_vm0, %v838_v2  ;;  %v220_v3 = vld [vmem:[%s1136_s2] sm:$0xff] (!%p185_p12)  ;;  %835 = vset.pattern.permute.xlu0 (!%p185_p12), %v909_v5  ;;  %v221_v8 = vld [vmem:[%s1136_s2 + $0x8] sm:$0xff] (!%p185_p12)  ;;  %v223_v9 = vld [vmem:[%s1136_s2 + $0x18] sm:$0xff] (!%p185_p12)  ;;  %v910_v21 = vmov (!%p185_p12), 0.0  }
  0x1f   : > { %s193_s10 = scalar_lea.vmem (!%p185_p12), [#allocation2], %s718_s7  ;;  %836 = vset.pattern.permute.xlu1 (!%p185_p12), %v909_v5  ;;  %226 = vperm.xlu0 (!%p185_p12), %835, %v220_v3   ;;  %v324_v10 = vld [vmem:[%s1136_s2 + $0x20] sm:$0xff] (!%p185_p12)  ;;  %v325_v11 = vld [vmem:[%s1136_s2 + $0x28] sm:$0xff] (!%p185_p12)  ;;  %v393_v12 = vld [vmem:[%s1136_s2 + $0x30] sm:$0xff] (!%p185_p12)  ;;  %vm911_vm1 = vmmov (!%p185_p12), 0   ;;  %vm341_vm2 = vcmask (!%p185_p12), 261120  }
  0x20   : > { %v1000_v4 = vld [vmem:[%s193_s10] sm:$0xff] (!%p185_p12)   ;;  %236 = vperm.xlu1 (!%p185_p12), %836, %v222_v6   ;;  %v394_v13 = vld [vmem:[%s1136_s2 + $0x38] sm:$0xff] (!%p185_p12)  ;;  %v492_v16 = vld [vmem:[%s1136_s2 + $0x50] sm:$0xff] (!%p185_p12)  ;;  %761 = vmatprep.subr.bf16.mxu1 (!%p185_p12), %v910_v21  ;;  %s735_s28 = sshll.u32 (!%p185_p12), %s711_s16, 4  ;;  %s212_s29 = scalar_lea.vmem (!%p185_p12), [#allocation3], %s990_s4 }
  0x21   : > { %755 = vmatprep.subr.bf16.mxu0 (!%p185_p12), %v1000_v4  ;;  %v395_v14 = vld [vmem:[%s1136_s2 + $0x40] sm:$0xff] (!%p185_p12)  ;;  %v396_v15 = vld [vmem:[%s1136_s2 + $0x48] sm:$0xff] (!%p185_p12)  ;;  %v493_v17 = vld [vmem:[%s1136_s2 + $0x58] sm:$0xff] (!%p185_p12)  ;;  %765 = vmatprep.mubr.msk.bf16.mxu1 (!%p185_p12), %vm911_vm1, %v910_v21  ;;  %s651_s30 = sshll.u32 (!%p185_p12), %s212_s29, 4  ;;  %s1090_s7 = scalar_lea.hbm (!%p185_p12), %s1137_s3, %s735_s28  ;;  %s1092_s30 = int_to_ptr.vmem [resolvable:$true] %s651_s30 }
  0x22   : > { %756 = vmatpush3.bf16.msra.mxu0 (!%p185_p12), %v1000_v4  ;;  %v494_v18 = vld [vmem:[%s1136_s2 + $0x60] sm:$0xff] (!%p185_p12)  ;;  %v495_v19 = vld [vmem:[%s1136_s2 + $0x68] sm:$0xff] (!%p185_p12)  ;;  %v588_v20 = vld [vmem:[%s1136_s2 + $0x70] sm:$0x1] (!%p185_p12)  ;;  %s639_s16 = scalar_lea.sflag (!%p185_p12), [#allocation4], %s990_s4  ;;  %s845_s8 = scalar_lea.vmem (!%p185_p12), %s1092_s30, 16 }
  0x23   : > { %231 = vperm.xlu0 (!%p185_p12), %835, %v221_v8   ;;  %v840_v40 = vld [vmem:[%s1135_s1 + $0x10] sm:$0xff] (!%p185_p12)   ;;  %v841_v41 = vld [vmem:[%s1135_s1 + $0x18] sm:$0xff] (!%p185_p12)   ;;  %v842_v53 = vld [vmem:[%s1135_s1 + $0x20] sm:$0xff] (!%p185_p12)   ;;  %p846_p13 = scmp.ne.s32.totalorder (!%p185_p12), %s1092_s30, %s845_s8  ;;  %s912_s9 = smov (!%p185_p12), [#allocation3]  }
  0x24   : > { %241 = vperm.xlu1 (!%p185_p12), %836, %v223_v9   ;;  %v843_v54 = vld [vmem:[%s1135_s1 + $0x28] sm:$0xff] (!%p185_p12)   ;;  %v844_v9 = vld [vmem:[%s1135_s1 + $0x30] sm:$0xff] (!%p185_p12)   ;;  %s849_s10 = sshll.u32 (!%p185_p12), %s912_s9, 4  ;;  %s850_s10 = int_to_ptr.vmem [resolvable:$false] %s849_s10 }
  0x25   : > { %758 = vmatmul.mubr.msk.bf16.vlgmr.msra.gmra.mrb[0].mxu0 %vm260_vm0, %v839_v7  ;;  %p847_p0 = pnand %p846_p13, %p971_p6  ;;  %s851_s11 = scalar_lea.vmem %s850_s10, 32 }
  0x26   : > { %773 = vmatprep.mubr.msk.bf16.mxu0 %vm341_vm2, %v841_v41  ;;  %p852_p2 = scmp.lt.s32.totalorder %s1092_s30, %s850_s10  ;;  %p853_p3 = scmp.lt.s32.totalorder %s851_s11, %s845_s8 }
  0x27   : > { %328 = vperm.xlu0 %835, %v324_v10   ;;  %p848_p1 = pneg %p847_p0 }
  0x28   : > { %333 = vperm.xlu1 %836, %v325_v11   ;;  %p854_p4 = por %p853_p3, %p852_p2 }
  0x2a   : > { %p855_p5 = pnand %p854_p4, %p848_p1 }
  0x2b   : > { %399 = vperm.xlu0 %835, %v393_v12  }
  0x2c   : > { %404 = vperm.xlu1 %836, %v394_v13  }
  0x2f   : > { %409 = vperm.xlu0 %835, %v395_v14  }
  0x30   : > { %414 = vperm.xlu1 %836, %v396_v15  }
  0x33   : > { %498 = vperm.xlu0 %835, %v492_v16  }
  0x34   : > { %503 = vperm.xlu1 %836, %v493_v17  }
  0x37   : > { %508 = vperm.xlu0 %835, %v494_v18  }
  0x38   : > { %513 = vperm.xlu1 %836, %v495_v19  }
  0x3b   : > { %591 = vperm.xlu0 %835, %v588_v20  }
  0x9e   : > { %v227_v23 = vpop.permute.xlu0 %226 }
  0x9f   : > { %v237_v22 = vpop.permute.xlu1 %236 }
  0xa2   : > { %v232_v30 = vpop.permute.xlu0 %231 }
  0xa3   : > { %v242_v27 = vpop.permute.xlu1 %241 }
  0xa6   : > { %v329_v42 = vpop.permute.xlu0 %328 }
  0xa7   : > { %v334_v46 = vpop.permute.xlu1 %333 }
  0xaa   : > { %v400_v55 = vpop.permute.xlu0 %399 }
  0xab   : > { %v405_v56 = vpop.permute.xlu1 %404 }
  0xae   : > { %v410_v57 = vpop.permute.xlu0 %409 }
  0xaf   : > { %v415_v61 = vpop.permute.xlu1 %414 }
  0xb2   : > { %v499_v10 = vpop.permute.xlu0 %498 }
  0xb3   : > { %v504_v11 = vpop.permute.xlu1 %503 }
  0xb6   : > { %v509_v12 = vpop.permute.xlu0 %508 }
  0xb7   : > { %v514_v16 = vpop.permute.xlu1 %513 }
  0xf8   : > { %v759_v24 = vpop.f32.mrb[0].mxu0 }
  0xf9   : > { %v310_v25 = vadd.f32 %v759_v24, %v237_v22  ;;  %v301_v26 = vpop.f32.mrb[1].mxu0 }
  0xfa   : > { %v302_v28 = vadd.f32 %v301_v26, %v227_v23  ;;  %v760_v29 = vpop.f32.mrb[2].mxu0 }
  0xfb   : > { %v313_v31 = vadd.f32 %v760_v29, %v242_v27  ;;  %v304_v32 = vpop.f32.mrb[3].mxu0  ;;  %v318_v34 = vmax.f32 %v310_v25, 0.0  ;;  %v587_v29 = vld [vmem:[%s1135_s1 + $0x38] sm:$0x1] }
  0xfc   : > { %v305_v33 = vadd.f32 %v304_v32, %v232_v30  ;;  %v316_v36 = vmax.f32 %v302_v28, 0.0  ;;  %v592_v30 = vpop.permute.xlu0 %591 }
  0xfd   : > { %v319_v35 = vmax.f32 %v313_v31, 0.0 }
  0xfe   : > { %v317_v37 = vmax.f32 %v305_v33, 0.0 }
  0xff   : > { %v321_v38 = vpack.c.bf16 %v319_v35, %v318_v34 }
 0x100   : > { %v320_v39 = vpack.c.bf16 %v317_v37, %v316_v36 }
 0x102   : > { %762 = vmatpush3.bf16.msra.mxu1 %v320_v39 }
 0x103   : > { %763 = vmatprep.subr.bf16.mxu1 %v910_v21 }
 0x106   : > { %764 = vmatpush3.bf16.msra.mxu1 %v321_v38 }
 0x109   : > { %766 = vmatmul.mubr.msk.bf16.vlgmr.msra.gmra.mrb[0].mxu1 %vm341_vm2, %v840_v40 }
 0x10a   : > { %781 = vmatprep.mubr.msk.bf16.mxu1 %vm341_vm2, %v843_v54 }
 0x1dc   : > { %v379_v43 = vpop.f32.mrb[0].mxu1 }
 0x1dd   : > { %v380_v44 = vadd.f32 %v379_v43, %v329_v42  ;;  %v767_v45 = vpop.f32.mrb[1].mxu1 }
 0x1de   : > { %v382_v47 = vpop.f32.mrb[2].mxu1 }
 0x1df   : > { %v383_v48 = vadd.f32 %v382_v47, %v334_v46  ;;  %v768_v49 = vpop.f32.mrb[3].mxu1  ;;  %v386_v50 = vmax.f32 %v380_v44, 0.0 }
 0x1e1   : > { %v387_v51 = vmax.f32 %v383_v48, 0.0 }
 0x1e3   : > { %v388_v52 = vpack.c.bf16 %v387_v51, %v386_v50 }
 0x1e5   : > { %769 = vmatprep.subr.bf16.mxu0 %v388_v52 }
 0x1e6   : > { %770 = vmatpush3.bf16.msra.mxu0 %v388_v52 }
 0x1e7   : > { %771 = vmatprep.subr.bf16.mxu0 %v1000_v4 }
 0x1ea   : > { %772 = vmatpush3.bf16.msra.mxu0 %v1000_v4 }
 0x1eb   : > { %785 = vmatprep.subr.bf16.mxu0 %v910_v21 }
 0x1ed   : > { %774 = vmatmul.mubr.msk.bf16.vlgmr.msra.gmra.mrb[4].mxu0 %vm341_vm2, %v842_v53 }
 0x1ee   : > { %789 = vmatprep.mubr.msk.bf16.mxu0 %vm911_vm1, %v910_v21 }
 0x2c0   : > { %v775_v58 = vpop.f32.mrb[4].mxu0 }
 0x2c1   : > { %v476_v59 = vadd.f32 %v775_v58, %v410_v57  ;;  %v467_v60 = vpop.f32.mrb[5].mxu0 }
 0x2c2   : > { %v468_v62 = vadd.f32 %v467_v60, %v400_v55  ;;  %v776_v63 = vpop.f32.mrb[6].mxu0 }
 0x2c3   : > { %v479_v0 = vadd.f32 %v776_v63, %v415_v61  ;;  %v470_v1 = vpop.f32.mrb[7].mxu0  ;;  %v484_v3 = vmax.f32 %v476_v59, 0.0 }
 0x2c4   : > { %v471_v2 = vadd.f32 %v470_v1, %v405_v56  ;;  %v482_v5 = vmax.f32 %v468_v62, 0.0 }
 0x2c5   : > { %v485_v4 = vmax.f32 %v479_v0, 0.0 }
 0x2c6   : > { %v483_v6 = vmax.f32 %v471_v2, 0.0 }
 0x2c7   : > { %v487_v7 = vpack.c.bf16 %v485_v4, %v484_v3 }
 0x2c8   : > { %v486_v8 = vpack.c.bf16 %v483_v6, %v482_v5 }
 0x2ca   : > { %777 = vmatprep.subr.bf16.mxu1 %v486_v8 }
 0x2cb   : > { %778 = vmatpush3.bf16.msra.mxu1 %v486_v8 }
 0x2cc   : > { %779 = vmatprep.subr.bf16.mxu1 %v487_v7 }
 0x2cf   : > { %780 = vmatpush3.bf16.msra.mxu1 %v487_v7 }
 0x2d2   : > { %782 = vmatmul.mubr.msk.bf16.vlgmr.msra.gmra.mrb[4].mxu1 %vm341_vm2, %v844_v9 }
 0x3a5   : > { %v783_v13 = vpop.f32.mrb[4].mxu1 }
 0x3a6   : > { %v575_v14 = vadd.f32 %v783_v13, %v509_v12  ;;  %v566_v15 = vpop.f32.mrb[5].mxu1 }
 0x3a7   : > { %v567_v17 = vadd.f32 %v566_v15, %v499_v10  ;;  %v784_v18 = vpop.f32.mrb[6].mxu1 }
 0x3a8   : > { %v578_v19 = vadd.f32 %v784_v18, %v514_v16  ;;  %v569_v20 = vpop.f32.mrb[7].mxu1  ;;  %v583_v23 = vmax.f32 %v575_v14, 0.0 }
 0x3a9   : > { %v570_v22 = vadd.f32 %v569_v20, %v504_v11  ;;  %v581_v25 = vmax.f32 %v567_v17, 0.0 }
 0x3aa   : > { %v584_v24 = vmax.f32 %v578_v19, 0.0 }
 0x3ab   : > { %v582_v26 = vmax.f32 %v570_v22, 0.0 }
 0x3ac   : > { %v586_v27 = vpack.c.bf16 %v584_v24, %v583_v23 }
 0x3ad   : > { %v585_v28 = vpack.c.bf16 %v582_v26, %v581_v25 }
 0x3af   : > { %786 = vmatpush3.bf16.msra.mxu0 %v585_v28 }
 0x3b0   : > { %787 = vmatprep.subr.bf16.mxu0 %v910_v21 }
 0x3b3   : > { %788 = vmatpush3.bf16.msra.mxu0 %v586_v27 }
 0x3b6   : > { %790 = vmatmul.mubr.msk.bf16.vlgmr.msra.gmra.mrb[8].mxu0 %vm341_vm2, %v587_v29 }
 0x489   : > { %v631_v31 = vpop.f32.mrb[8].mxu0 }
 0x48a   : > { %v632_v32 = vadd.f32 %v631_v31, %v592_v30  ;;  %v791_v33 = vpop.f32.mrb[9].mxu0 }
 0x48b   : > { %v634_v21 = vpop.f32.mrb[10].mxu0 }
 0x48c   : > { %637 = vst [vmem:[%s212_s29] sm:$0x1] %v632_v32  ;;  %v792_v34 = vpop.f32.mrb[11].mxu0 }
 0x48d   : > { %858 = shalt.err (!%p855_p5)
}
 0x48e   : > { %s859_s4 = scalar_lea.hbm %s1090_s7, 16  ;;  %s863_s20 = scalar_lea.hbm %s1137_s3, 32 }
 0x48f   : > { %p860_p7 = scmp.ne.s32.totalorder %s1090_s7, %s859_s4  ;;  %p864_p12 = scmp.lt.u32.totalorder %s1090_s7, %s1137_s3 }
 0x490   : > { %p865_p13 = scmp.lt.u32.totalorder %s863_s20, %s859_s4  ;;  %p867_p1 = scmp.lt.u32.totalorder %s859_s4, %s1090_s7 }
 0x491   : > { %p861_p10 = pnand %p860_p7, %p971_p6 }
 0x492   : > { %p866_p0 = por %p865_p13, %p864_p12 }
 0x493   : > { %p862_p11 = pneg %p861_p10 }
 0x494   : > { %p868_p2 = por %p867_p1, %p866_p0 }
 0x496   : > { %p869_p3 = pnand %p868_p2, %p862_p11 }
 0x498   : > { %872 = shalt.err (!%p869_p3)
}
 0x499   : > { %793 = dma.vmem_to_hbm [thread:$0]  (%p971_p6), %s1092_s30, 16, %s1090_s7, %s639_s16  }
 0x49a PF: > { %s663_s26 = sand.u32 1, %s895_s12   ;;  %p796_p4 = pnand %p714_p9, %p975_p8 }
 0x49b   : > { %s664_s27 = scalar_lea.sflag [#allocation4], %s663_s26 }
 0x49c   : > { %890 = dma.done.wait (!%p796_p4), %s664_s27, 16  }
 0x49d   : > { %892 = vsyncadd (!%p796_p4), %s664_s27, 4294967280  ;;  %p13_p5 = scmp.ge.s32.totalorder %s956_s18, 4   ;;  %s1140_s12 = smov %s899_s13 }
 0x49e   : > { %s1141_s13 = smov %s903_s14  ;;  %s1142_s14 = smov %s969_s21 }
 0x49f   : > { %s1143_s15 = smov %s956_s18  ;;  %15 = sbr.rel (!%p13_p5) target bundleno = 3 (0x3), region = 113 }
 0x4a6   :  { %668 = vsyncpa [#allocation4], 1 }
 0x4a7   :  { %670 = vsyncpa [#allocation4 + $0x1], 1 }

</bundles_post_ra>
